<compile_context>
chip_gen: v6e
topology: v6e:2x2x1
jax: 0.10.0
libtpu: 0.0.40
codegen_flags: <defaults>
</compile_context>

<pallas_src>
import functools

import jax
import jax.numpy as jnp
from jax.experimental import pallas as pl
from jax.experimental.pallas import tpu as pltpu


def nsp_kernel(x_ref, w_ref, b_ref, o_ref):
    # x_ref: (tm, D), w_ref: (D, 2), b_ref: (1, 2) f32, o_ref: (tm, 2)
    logits = jnp.dot(x_ref[...], w_ref[...],
                     preferred_element_type=jnp.float32)
    logits = logits + b_ref[...]                                   # (tm, 2) f32

    # Closed-form 2-class log-softmax (no cross-lane max/sum reductions):
    #   d = l0 - l1 ; lp0 = -softplus(-d) = d - softplus(d) ; lp1 = -softplus(d)
    d = logits[:, 0:1] - logits[:, 1:2]                            # (tm, 1)
    sp = jnp.maximum(d, 0.0) + jnp.log1p(jnp.exp(-jnp.abs(d)))     # softplus(d), stable
    lp0 = d - sp
    lp1 = -sp
    col = jax.lax.broadcasted_iota(jnp.int32, logits.shape, 1)     # (tm, 2)
    o_ref[...] = jnp.where(col == 0, lp0, lp1).astype(o_ref.dtype)


def _round_up(x, m):
    return ((x + m - 1) // m) * m


def _vmem_capacity_bytes():
    """Per-TensorCore VMEM capacity; conservative fallback if the query fails."""
    try:
        return int(pltpu.get_tpu_info().vmem_capacity_bytes)
    except Exception:
        return 64 * 1024 * 1024          # v7x-sized fallback (safe everywhere)


def _pick_tiling(M, D, x_itemsize, out_itemsize):
    """Pick (tm, vmem_limit_bytes).

    Largest double-buffered row tile that fits ~1/3 of this generation's VMEM
    (counting the lane-padded 2->128 output tile), then reshaped so the grid
    has an even number (>= 2) of steps whenever M allows — v7x's two
    TensorCores each get half, and the extra steps are noise on v5e/v6e.
    """
    capacity = _vmem_capacity_bytes()
    vmem_limit = max(32 * 1024 * 1024,
                     min(64 * 1024 * 1024, capacity - 16 * 1024 * 1024))

    # Per-row VMEM cost: double-buffered x row + double-buffered out row
    # (the (tm, 2) out tile is lane-padded to 128 lanes in VMEM).
    per_row = 2 * (D * x_itemsize + 128 * max(out_itemsize, 4))
    budget = capacity // 3
    tm = max(8, min(8192, (budget // per_row) // 8 * 8))

    M8 = _round_up(M, 8)
    tm = min(tm, M8)
    if M < 8:
        tm = M                            # single block == full (tiny) array
    elif M8 >= 16:
        g = max(2, pl.cdiv(M8, tm))
        if g % 2:                         # hard-require an even step count
            g += 1
        tm = max(8, _round_up(pl.cdiv(M8, g), 8))
    return tm, vmem_limit


@functools.partial(jax.jit, static_argnames=("tm", "out_dtype", "cast_to_bf16"))
def nsp_forward(x, w, b, *, tm=None, out_dtype=None, cast_to_bf16=False):
    """NSP head: log_softmax(x @ w + b, axis=-1).

    x: [B, S, D]; w: [D, 2] (= W^T of nn.Linear(d_model, 2)); b: [2] or [1, 2].
    Returns [B, S, 2] log-probabilities.
    """
    B, S, D = x.shape
    M = B * S
    x2 = x.reshape(M, D)
    if cast_to_bf16:
        # Numerics-visible, caller-gated: halves the HBM stream on f32 inputs.
        x2 = x2.astype(jnp.bfloat16)
    if out_dtype is None:
        out_dtype = x.dtype

    w2 = w.astype(x2.dtype)
    b2 = b.reshape(1, 2).astype(jnp.float32)

    auto_tm, vmem_limit = _pick_tiling(M, D, x2.dtype.itemsize,
                                       jnp.dtype(out_dtype).itemsize)
    if tm is None:
        tm = auto_tm
    grid = pl.cdiv(M, tm)                 # no padding: last block is masked

    out = pl.pallas_call(
        nsp_kernel,
        out_shape=jax.ShapeDtypeStruct((M, 2), out_dtype),
        grid_spec=pltpu.PrefetchScalarGridSpec(
            num_scalar_prefetch=0,
            grid=(grid,),
            in_specs=[
                pl.BlockSpec((tm, D), lambda i: (i, 0)),   # x row-tile (pipelined)
                pl.BlockSpec((D, 2), lambda i: (0, 0)),    # weight, VMEM-resident
                pl.BlockSpec((1, 2), lambda i: (0, 0)),    # bias, VMEM-resident
            ],
            out_specs=pl.BlockSpec((tm, 2), lambda i: (i, 0)),
        ),
        compiler_params=pltpu.CompilerParams(
            dimension_semantics=("parallel",),
            vmem_limit_bytes=vmem_limit,
        ),
    )(x2, w2, b2)

    return out.reshape(B, S, 2)


def nsp_reference(x, w, b):
    logits = jnp.einsum("bsd,dc->bsc", x, w) + b.reshape(2)
    return jax.nn.log_softmax(logits, axis=-1)


if __name__ == "__main__":
    # Small shapes consistent with the module (d_model hidden dim, seq of tokens).
    B, S, D = 2, 8, 32

    key = jax.random.PRNGKey(0)
    kx, kw, kb = jax.random.split(key, 3)

    x = jax.random.normal(kx, (B, S, D), dtype=jnp.float32)

    # Deterministic nn.Linear(d_model, 2)-style init: U(-1/sqrt(D), 1/sqrt(D)).
    bound = 1.0 / (D ** 0.5)
    w = jax.random.uniform(kw, (D, 2), minval=-bound, maxval=bound,
                           dtype=jnp.float32)                 # stored as (D, 2) = W^T
    b = jax.random.uniform(kb, (2,), minval=-bound, maxval=bound,
                           dtype=jnp.float32)

    out = jax.block_until_ready(nsp_forward(x, w, b))
    ref = nsp_reference(x, w, b)
    assert out.shape == (B, S, 2)
    assert jnp.allclose(out, ref, atol=1e-5, rtol=1e-5), "mismatch vs reference"

    # Ragged-M path (M = 15 is not a tile multiple): exercises the no-pad,
    # masked-last-block path that replaced the jnp.pad copy.
    B2, S2 = 3, 5
    x_r = jax.random.normal(jax.random.PRNGKey(1), (B2, S2, D), dtype=jnp.float32)
    out_r = jax.block_until_ready(nsp_forward(x_r, w, b))
    ref_r = nsp_reference(x_r, w, b)
    assert out_r.shape == (B2, S2, 2)
    assert jnp.allclose(out_r, ref_r, atol=1e-5, rtol=1e-5), "mismatch vs reference (ragged M)"

    print("KERNEL_OK")
</pallas_src>

<mosaic_0001>
module attributes {stable_mosaic.version = 11 : i64} {
  func.func @nsp_kernel(%arg0: i32, %arg1: memref<8x32xf32, #tpu.memory_space<vmem>>, %arg2: memref<32x2xf32, #tpu.memory_space<vmem>>, %arg3: memref<1x2xf32, #tpu.memory_space<vmem>>, %arg4: memref<8x2xf32, #tpu.memory_space<vmem>>) attributes {dimension_semantics = [#tpu.dimension_semantics<parallel>], iteration_bounds = array<i64: 2>, scalar_prefetch = 0 : i64, scratch_operands = 0 : i64, tpu.core_type = #tpu.core_type<tc>, window_params = [{transform_indices = @transform_0, window_bounds = array<i64: 8, 32>}, {pipeline_mode = #tpu.pipeline_mode<synchronous>, transform_indices = @transform_1, window_bounds = array<i64: 32, 2>}, {pipeline_mode = #tpu.pipeline_mode<synchronous>, transform_indices = @transform_2, window_bounds = array<i64: 1, 2>}, {transform_indices = @transform_3, window_bounds = array<i64: 8, 2>}]} {
    %c0 = arith.constant 0 : index
    %c0_0 = arith.constant 0 : index
    %0 = vector.load %arg1[%c0, %c0_0] : memref<8x32xf32, #tpu.memory_space<vmem>>, vector<8x32xf32>
    %c0_1 = arith.constant 0 : index
    %c0_2 = arith.constant 0 : index
    %1 = vector.load %arg2[%c0_1, %c0_2] : memref<32x2xf32, #tpu.memory_space<vmem>>, vector<32x2xf32>
    %cst = arith.constant dense<0.000000e+00> : vector<8x2xf32>
    %2 = tpu.matmul %0, %1, %cst {dimension_numbers = #tpu.dot_dimension_numbers<[1], [0], [0], [1], [0, 0, 1, 1], [], []>} : vector<8x32xf32>, vector<32x2xf32>, vector<8x2xf32> -> vector<8x2xf32>
    %c0_3 = arith.constant 0 : index
    %c0_4 = arith.constant 0 : index
    %3 = vector.load %arg3[%c0_3, %c0_4] : memref<1x2xf32, #tpu.memory_space<vmem>>, vector<1x2xf32>
    %4 = vector.broadcast %3 : vector<1x2xf32> to vector<8x2xf32>
    %5 = arith.addf %2, %4 : vector<8x2xf32>
    %6 = vector.extract_strided_slice %5 {offsets = [0, 0], sizes = [8, 1], strides = [1, 1]} : vector<8x2xf32> to vector<8x1xf32>
    %7 = vector.extract_strided_slice %5 {offsets = [0, 1], sizes = [8, 1], strides = [1, 1]} : vector<8x2xf32> to vector<8x1xf32>
    %8 = arith.subf %6, %7 : vector<8x1xf32>
    %cst_5 = arith.constant 0.000000e+00 : f32
    %9 = vector.broadcast %cst_5 : f32 to vector<8x1xf32>
    %10 = arith.maximumf %8, %9 : vector<8x1xf32>
    %11 = math.absf %8 : vector<8x1xf32>
    %cst_6 = arith.constant 0.000000e+00 : f32
    %12 = vector.broadcast %cst_6 : f32 to vector<8x1xf32>
    %13 = arith.subf %12, %11 : vector<8x1xf32>
    %14 = math.exp %13 : vector<8x1xf32>
    %15 = math.log1p %14 : vector<8x1xf32>
    %16 = arith.addf %10, %15 : vector<8x1xf32>
    %17 = arith.subf %8, %16 : vector<8x1xf32>
    %cst_7 = arith.constant 0.000000e+00 : f32
    %18 = vector.broadcast %cst_7 : f32 to vector<8x1xf32>
    %19 = arith.subf %18, %16 : vector<8x1xf32>
    %20 = tpu.iota {dimensions = array<i32: 1>} : vector<8x2xi32>
    %c0_i32 = arith.constant 0 : i32
    %21 = vector.broadcast %c0_i32 : i32 to vector<8x2xi32>
    %22 = arith.cmpi eq, %20, %21 : vector<8x2xi32>
    %23 = vector.shape_cast %17 : vector<8x1xf32> to vector<8x1xf32>
    %24 = vector.broadcast %23 : vector<8x1xf32> to vector<8x2xf32>
    %25 = vector.shape_cast %19 : vector<8x1xf32> to vector<8x1xf32>
    %26 = vector.broadcast %25 : vector<8x1xf32> to vector<8x2xf32>
    %27 = arith.select %22, %24, %26 : vector<8x2xi1>, vector<8x2xf32>
    %c0_8 = arith.constant 0 : index
    %c0_9 = arith.constant 0 : index
    %28 = vector.load %arg4[%c0_8, %c0_9] : memref<8x2xf32, #tpu.memory_space<vmem>>, vector<8x2xf32>
    tpu.vector_store %arg4[%c0_8, %c0_9], %27 {strides = array<i32>} : memref<8x2xf32, #tpu.memory_space<vmem>>, vector<8x2xf32>,
    return
  }
  func.func @transform_0(%arg0: i32) -> (i32, i32) {
    %c0_i32 = arith.constant 0 : i32
    %c0_i32_0 = arith.constant 0 : i32
    return %arg0, %c0_i32 : i32, i32
  }
  func.func @transform_1(%arg0: i32) -> (i32, i32) {
    %c0_i32 = arith.constant 0 : i32
    %c0_i32_0 = arith.constant 0 : i32
    %c0_i32_1 = arith.constant 0 : i32
    return %c0_i32, %c0_i32_0 : i32, i32
  }
  func.func @transform_2(%arg0: i32) -> (i32, i32) {
    %c0_i32 = arith.constant 0 : i32
    %c0_i32_0 = arith.constant 0 : i32
    %c0_i32_1 = arith.constant 0 : i32
    return %c0_i32, %c0_i32_0 : i32, i32
  }
  func.func @transform_3(%arg0: i32) -> (i32, i32) {
    %c0_i32 = arith.constant 0 : i32
    %c0_i32_0 = arith.constant 0 : i32
    return %arg0, %c0_i32 : i32, i32
  }
}

</mosaic_0001>

<bundles_post_ra>
// kernel: nsp_forward.1
= control target key start
LH: loop header
LB: loop body
LE: loop exit
PB: predicated region body
PF: predicated region fallthrough
CT: control target
= control target key end

     0   :  { %s420_s12 = smov 0   ;;  %s459_s0 = inlined_call_operand.vmem [shape: f32[16,32], index: 0, kind: input, shape index: {}]   ;;  %s460_s1 = inlined_call_operand.vmem [shape: f32[32,2], index: 1, kind: input, shape index: {}]   ;;  %s461_s2 = inlined_call_operand.vmem [shape: f32[1,2], index: 2, kind: input, shape index: {}]   ;;  %s462_s3 = inlined_call_operand.vmem [shape: f32[16,2], index: 3, kind: output, shape index: {}]  }
   0x1 LB: > { %s343_s13 = sadd.s32 4294967295, %s394_s12   ;;  %p347_p0 = scmp.ge.s32.totalorder %s394_s12, 1  ;;  %s394_s12 = sphi %s420_s12, %s13_s12  }
   0x2   : > { %p136_p1 = scmp.lt.s32.totalorder %s394_s12, 3 }
   0x4   : > { %p137_p2 = pnand %p347_p0, %p136_p1 }
   0x5   : > { %p158_p3 = scmp.lt.s32.totalorder (!%p137_p2), %s343_s13, 1  ;;  %s399_s28 = smov (!%p137_p2), 127  }
   0x6   : > { %140 = sbr.rel (%p137_p2) target bundleno = 501 (0x1f5), region = 32 }
   0xb   : > { %v170_v0 = vld [vmem:[%s460_s1 + $0x18] sm:$0xff]  ;;  %v396_v1 = vmov 0.0   ;;  %v169_v2 = vld [vmem:[%s460_s1 + $0x10] sm:$0xff]  ;;  %vm397_vm0 = vmmov 0   ;;  %s464_s13 = smov (!%p158_p3, %s343_s13), 1  ;;  %v168_v3 = vld [vmem:[%s460_s1 + $0x8] sm:$0xff]  ;;  %v274_v29 = vlaneseq }
   0xc   : > { %359 = vmatprep.subr.mxu0 %v396_v1  ;;  %367 = vmatprep.mubr.msk.f32.mxu0 %vm397_vm0, %v396_v1  ;;  %s348_s20 = sshll.u32 %s464_s13, 3  ;;  %v167_v4 = vld [vmem:[%s460_s1] sm:$0xff]  ;;  %vm178_vm1 = vcmask 261120   ;;  %v398_v7 = vmov 0   ;;  %vm288_vm4 = vcmask 15360  }
   0xd   : > { %360 = vmatpush3.msra.mxu0 %v170_v0  ;;  %s161_s25 = scalar_lea.vmem %s459_s0, %s348_s20  ;;  %v350_v6 = vld [vmem:[%s461_s2] ss:$0 sm:$0xff]  ;;  %383 = vset.pattern.permute.xlu1 %v398_v7  ;;  %v275_v30 = vand.u32 127, %v274_v29  ;;  %s165_s4 = scalar_lea.vmem %s462_s3, %s348_s20 }
   0xe   : > { %361 = vmatprep.subr.mxu0 %v396_v1  ;;  %v166_v5 = vld [vmem:[%s161_s25] sm:$0xff]  ;;  %382 = vset.pattern.permute.xlu0 %v398_v7 }
   0xf   : > { %362 = vmatpush3.msra.mxu0 %v169_v2  ;;  %vm276_vm3 = vcmp.eq.s32.totalorder %v275_v30, 0 }
  0x10   : > { %363 = vmatprep.subr.mxu0 %v396_v1 }
  0x11   : > { %364 = vmatpush3.msra.mxu0 %v168_v3 }
  0x12   : > { %365 = vmatprep.subr.mxu0 %v396_v1 }
  0x13   : > { %366 = vmatpush3.msra.mxu0 %v167_v4 }
  0x14   : > { %368 = vmatmul.mubr.msk.f32.vlgmr.msra.gmra.mxu0 %vm178_vm1, %v166_v5 }
  0xd4   : > { %v248_v8 = vpop.f32.mrf.mxu0 }
  0xd5   : > { %v249_v9 = vadd.f32 %v350_v6, %v248_v8 }
  0xd6   : > { %v369_v10 = vpop.f32.mrf.mxu0 }
  0xd7   : > { %253 = vrot.lane.b32.xlu0 %v249_v9, %s399_s28 }
 0x149   : > { %v254_v11 = vpop.permute.xlu0 %253 }
 0x14a   : > { %v256_v12 = vsub.f32 %v249_v9, %v254_v11 }
 0x14c   : > { %v258_v13 = vand.u32 2147483647, %v256_v12  ;;  %v257_v24 = vmax.f32 %v256_v12, 0.0 }
 0x14e   : > { %v259_v14 = vsub.f32 0.0, %v258_v13 }
 0x150   : > { %v260_v15 = vmul.f32 1.442695, %v259_v14 }
 0x152   : > { %384 = vpow2.f32 %v260_v15 }
 0x15f   : > { %v385_v16 = vpop.eup %384 }
 0x160   : > { %v262_v17 = vadd.f32 1.0, %v385_v16  ;;  %v265_v18 = vmul.f32 -0.5, %v385_v16  ;;  %v268_v20 = vand.u32 2147483647, %v385_v16 }
 0x162   : > { %386 = vlog2.f32 %v262_v17  ;;  %v266_v19 = vadd.f32 1.0, %v265_v18  ;;  %vm269_vm2 = vcmp.lt.f32.partialorder %v268_v20, 0.0004427343 }
 0x164   : > { %v267_v23 = vmul.f32 %v385_v16, %v266_v19 }
 0x16f   : > { %v387_v21 = vpop.eup %386 }
 0x170   : > { %v264_v22 = vmul.f32 0.6931472, %v387_v21 }
 0x172   : > { %v270_v25 = vsel %vm269_vm2, %v267_v23, %v264_v22 }
 0x173   : > { %v271_v26 = vadd.f32 %v270_v25, %v257_v24 }
 0x175   : > { %v273_v27 = vsub.f32 0.0, %v271_v26  ;;  %v272_v28 = vsub.f32 %v256_v12, %v271_v26 }
 0x177   : > { %284 = vperm.xlu1 %383, %v273_v27   ;;  %279 = vperm.xlu0 %382, %v272_v28  }
 0x1f2   : > { %v285_v31 = vpop.permute.xlu1 %284  ;;  %v280_v32 = vpop.permute.xlu0 %279 }
 0x1f3   : > { %v287_v33 = vsel %vm276_vm3, %v280_v32, %v285_v31 }
 0x1f4   : > { %289 = vst.msk [vmem:[%s165_s4] sm:$0xff] %vm288_vm4, %v287_v33 }
 0x1f5 PF: > { %s13_s12 = sadd.s32 1, %s394_s12  }
 0x1f6   : > { %p10_p4 = scmp.ge.s32.totalorder %s13_s12, 4  }
 0x1f8   :  { %12 = sbr.rel (!%p10_p4) target bundleno = 1 (0x1), region = 62 }

</bundles_post_ra>
